<compile_context>
chip_gen: v5e
topology: v5e:2x2
jax: 0.10.0
libtpu: 0.0.40
codegen_flags: <defaults>
</compile_context>

<pallas_src>
import math
from functools import partial

import jax
import jax.numpy as jnp
from jax.experimental import pallas as pl
from jax.experimental.pallas import tpu as pltpu


def _round_up(x, m):
    return ((x + m - 1) // m) * m


# ---------------------------------------------------------------------------
# Fused kernel: one (row tile i, K tile k) step of  out = adj @ (x @ w) + b
# ---------------------------------------------------------------------------
def gcn_fused_kernel(adj_ref, x_ref, w_ref, b_ref, out_ref, acc_ref, *,
                     n_cols, tk, compute_dtype, mask_ragged_k, single_k):
    k = pl.program_id(1)

    # adj tile: zero the out-of-bounds columns of the ragged last K tile
    # (done in-kernel so the wrapper never pads/copies the N x N adjacency);
    # optional compute-dtype cast also happens on the tile, not in the wrapper.
    adj_tile = adj_ref[...]
    if mask_ragged_k:
        col = jax.lax.broadcasted_iota(jnp.int32, adj_tile.shape, 1)
        adj_tile = jnp.where(col < (n_cols - k * tk), adj_tile, 0.0)
    adj_tile = adj_tile.astype(compute_dtype)

    # support slab for this K tile: (tk, F_out_p) = x_tile @ w  (MXU)
    sup = jnp.dot(x_ref[...], w_ref[...],
                  preferred_element_type=jnp.float32).astype(compute_dtype)

    # aggregation: (tm, tk) @ (tk, F_out_p) -> f32
    prod = jnp.dot(adj_tile, sup, preferred_element_type=jnp.float32)

    bias = b_ref[...].astype(jnp.float32)

    if single_k:
        # One K step: skip the accumulator entirely.
        out_ref[...] = (prod + bias).astype(out_ref.dtype)
    else:
        @pl.when(k == 0)
        def _init():
            acc_ref[...] = prod            # init with first dot (no zero-fill)

        @pl.when(k > 0)
        def _accumulate():
            acc_ref[...] += prod

        @pl.when(k == pl.num_programs(1) - 1)
        def _finalize():
            out_ref[...] = (acc_ref[...] + bias).astype(out_ref.dtype)


# ---------------------------------------------------------------------------
# Wrapper
# ---------------------------------------------------------------------------
def graph_convolution(adj, x, weight, bias=None, *, tm=None, tk=None,
                      compute_dtype=None):
    """Pallas TPU implementation of GraphConvolution.forward.

    adj:    [N, N]     dense adjacency (streamed as-is, never padded/copied)
    x:      [N, F_in]  node features
    weight: [F_in, F_out]
    bias:   [F_out] or None
    returns [N, F_out] in x.dtype
    """
    N, F_in = x.shape
    F_in_w, F_out = weight.shape
    assert adj.shape == (N, N)
    assert F_in_w == F_in

    out_dtype = x.dtype
    cdt = jnp.dtype(compute_dtype) if compute_dtype is not None else jnp.dtype(x.dtype)

    # Lane-dense output: pad F_out to a multiple of 128.
    F_out_p = _round_up(F_out, 128)
    Np = _round_up(N, 128)

    # Tile selection: big enough to amortize the ~0.35us/step overhead, small
    # enough to double-buffer comfortably inside v7x's 64 MiB VMEM; keep >=2
    # row blocks when N allows so megacore can shard the parallel row axis.
    if tm is None:
        tm = min(512, Np)
        if N >= 256 and pl.cdiv(N, tm) < 2:
            tm = max(128, _round_up(Np // 2, 8))
    if tk is None:
        tk = min(1024, Np)
    assert tm % 8 == 0 and tk % 128 == 0

    gm = pl.cdiv(N, tm)          # row tiles
    gk = pl.cdiv(N, tk)          # contraction tiles
    Nk = gk * tk

    # Only the SMALL operands are padded / cast in the wrapper.  adj's ragged
    # last K tile is masked in-kernel; its ragged last row tile only produces
    # out-of-bounds output rows, which Pallas drops on write.
    x_p = jnp.pad(x, ((0, Nk - N), (0, 0))).astype(cdt)
    w_p = jnp.pad(weight, ((0, 0), (0, F_out_p - F_out))).astype(cdt)
    b = bias if bias is not None else jnp.zeros((F_out,), jnp.float32)
    b_p = jnp.pad(b.astype(jnp.float32), (0, F_out_p - F_out)).reshape(1, F_out_p)

    kernel = partial(
        gcn_fused_kernel,
        n_cols=N, tk=tk, compute_dtype=cdt,
        mask_ragged_k=(N % tk != 0), single_k=(gk == 1))

    # Explicit VMEM budget: double-buffered blocks + accumulator + headroom.
    vmem_bytes = (
        2 * tm * tk * jnp.dtype(adj.dtype).itemsize      # adj tiles
        + 2 * tk * F_in * cdt.itemsize                   # x tiles
        + 2 * F_in * F_out_p * cdt.itemsize              # weight (resident)
        + 2 * F_out_p * 4                                # bias
        + 2 * tm * F_out_p * jnp.dtype(out_dtype).itemsize  # out blocks
        + tm * F_out_p * 4)                              # acc scratch
    vmem_limit = int(min(max(vmem_bytes + (2 << 20), 32 << 20), 64 << 20))

    out = pl.pallas_call(
        kernel,
        out_shape=jax.ShapeDtypeStruct((N, F_out_p), out_dtype),
        grid_spec=pltpu.PrefetchScalarGridSpec(
            num_scalar_prefetch=0,
            grid=(gm, gk),
            in_specs=[
                pl.BlockSpec((tm, tk), lambda i, k: (i, k)),         # adj
                pl.BlockSpec((tk, F_in), lambda i, k: (k, 0)),       # x
                pl.BlockSpec((F_in, F_out_p), lambda i, k: (0, 0)),  # weight
                pl.BlockSpec((1, F_out_p), lambda i, k: (0, 0)),     # bias
            ],
            out_specs=pl.BlockSpec((tm, F_out_p), lambda i, k: (i, 0)),
            scratch_shapes=[pltpu.VMEM((tm, F_out_p), jnp.float32)],
        ),
        compiler_params=pltpu.CompilerParams(
            dimension_semantics=("parallel", "arbitrary"),
            vmem_limit_bytes=vmem_limit),
    )(adj, x_p, w_p, b_p)

    if F_out_p != F_out:
        out = out[:, :F_out]
    return out


def init_params(key, in_features, out_features):
    """Deterministic init mirroring reset_parameters(): U(-stdv, stdv)."""
    stdv = 1.0 / math.sqrt(out_features)
    kw, kb = jax.random.split(key)
    weight = jax.random.uniform(kw, (in_features, out_features),
                                dtype=jnp.float32, minval=-stdv, maxval=stdv)
    bias = jax.random.uniform(kb, (out_features,),
                              dtype=jnp.float32, minval=-stdv, maxval=stdv)
    return weight, bias


def _make_graph(key, n):
    k_adj, k_x = jax.random.split(key)
    x = jax.random.normal(k_x, (n, 64), dtype=jnp.float32)
    a = jax.random.uniform(k_adj, (n, n), dtype=jnp.float32)
    a = (a > 0.8).astype(jnp.float32)
    adj = a + a.T + jnp.eye(n, dtype=jnp.float32)
    adj = adj / jnp.sum(adj, axis=1, keepdims=True)
    return adj, x


if __name__ == "__main__":
    key = jax.random.PRNGKey(0)
    k_g1, k_g2, k_g3, k_params = jax.random.split(key, 4)

    F_in, F_out = 64, 32
    weight, bias = init_params(k_params, F_in, F_out)

    # ---- case 1: N = 128 (single tile, no masking, single-K fast path) ----
    adj, x = _make_graph(k_g1, 128)
    out = jax.block_until_ready(graph_convolution(adj, x, weight, bias))
    ref = adj @ x @ weight + bias
    assert out.shape == (128, F_out)
    assert jnp.allclose(out, ref, atol=1e-4, rtol=1e-4)

    # ---- case 2: N = 100 (ragged tile -> in-kernel K mask, OOB rows dropped) ----
    adj2, x2 = _make_graph(k_g2, 100)
    out2 = jax.block_until_ready(graph_convolution(adj2, x2, weight, bias))
    ref2 = adj2 @ x2 @ weight + bias
    assert out2.shape == (100, F_out)
    assert jnp.allclose(out2, ref2, atol=1e-4, rtol=1e-4)

    # ---- case 3: N = 300 with small explicit tiles -> multi-step K accumulation ----
    adj3, x3 = _make_graph(k_g3, 300)
    out3 = jax.block_until_ready(
        graph_convolution(adj3, x3, weight, bias, tm=128, tk=128))
    ref3 = adj3 @ x3 @ weight + bias
    assert out3.shape == (300, F_out)
    assert jnp.allclose(out3, ref3, atol=1e-4, rtol=1e-4)

    # ---- case 4: bf16 compute (MXU-native on v6e/v7x), f32 accumulation ----
    out_bf16 = jax.block_until_ready(
        graph_convolution(adj, x, weight, bias, compute_dtype=jnp.bfloat16))
    assert jnp.allclose(out_bf16, ref, atol=5e-2, rtol=5e-2)

    # ---- case 5: no bias ----
    out_nb = jax.block_until_ready(graph_convolution(adj, x, weight, None))
    assert jnp.allclose(out_nb, adj @ x @ weight, atol=1e-4, rtol=1e-4)

    print("KERNEL_OK")
</pallas_src>

<mosaic_0001>
module attributes {stable_mosaic.version = 11 : i64} {
  func.func @gcn_fused_kernel(%arg0: i32, %arg1: i32, %arg2: memref<128x128xf32, #tpu.memory_space<vmem>>, %arg3: memref<128x64xf32, #tpu.memory_space<vmem>>, %arg4: memref<64x128xf32, #tpu.memory_space<vmem>>, %arg5: memref<1x128xf32, #tpu.memory_space<vmem>>, %arg6: memref<128x128xf32, #tpu.memory_space<vmem>>, %arg7: memref<128x128xf32, #tpu.memory_space<vmem>>) attributes {dimension_semantics = [#tpu.dimension_semantics<parallel>, #tpu.dimension_semantics<arbitrary>], iteration_bounds = array<i64: 1, 1>, scalar_prefetch = 0 : i64, scratch_operands = 1 : i64, tpu.core_type = #tpu.core_type<tc>, window_params = [{transform_indices = @transform_0, window_bounds = array<i64: 128, 128>}, {transform_indices = @transform_1, window_bounds = array<i64: 128, 64>}, {pipeline_mode = #tpu.pipeline_mode<synchronous>, transform_indices = @transform_2, window_bounds = array<i64: 64, 128>}, {pipeline_mode = #tpu.pipeline_mode<synchronous>, transform_indices = @transform_3, window_bounds = array<i64: 1, 128>}, {transform_indices = @transform_4, window_bounds = array<i64: 128, 128>}]} {
    %c0 = arith.constant 0 : index
    %c0_0 = arith.constant 0 : index
    %0 = vector.load %arg2[%c0, %c0_0] : memref<128x128xf32, #tpu.memory_space<vmem>>, vector<128x128xf32>
    %c0_1 = arith.constant 0 : index
    %c0_2 = arith.constant 0 : index
    %1 = vector.load %arg3[%c0_1, %c0_2] : memref<128x64xf32, #tpu.memory_space<vmem>>, vector<128x64xf32>
    %c0_3 = arith.constant 0 : index
    %c0_4 = arith.constant 0 : index
    %2 = vector.load %arg4[%c0_3, %c0_4] : memref<64x128xf32, #tpu.memory_space<vmem>>, vector<64x128xf32>
    %cst = arith.constant dense<0.000000e+00> : vector<128x128xf32>
    %3 = tpu.matmul %1, %2, %cst {dimension_numbers = #tpu.dot_dimension_numbers<[1], [0], [0], [1], [0, 0, 1, 1], [], []>} : vector<128x64xf32>, vector<64x128xf32>, vector<128x128xf32> -> vector<128x128xf32>
    %cst_5 = arith.constant dense<0.000000e+00> : vector<128x128xf32>
    %4 = tpu.matmul %0, %3, %cst_5 {dimension_numbers = #tpu.dot_dimension_numbers<[1], [0], [0], [1], [0, 0, 1, 1], [], []>} : vector<128x128xf32>, vector<128x128xf32>, vector<128x128xf32> -> vector<128x128xf32>
    %c0_6 = arith.constant 0 : index
    %c0_7 = arith.constant 0 : index
    %5 = vector.load %arg5[%c0_6, %c0_7] : memref<1x128xf32, #tpu.memory_space<vmem>>, vector<1x128xf32>
    %6 = vector.broadcast %5 : vector<1x128xf32> to vector<128x128xf32>
    %7 = arith.addf %4, %6 : vector<128x128xf32>
    %c0_8 = arith.constant 0 : index
    %c0_9 = arith.constant 0 : index
    %8 = vector.load %arg6[%c0_8, %c0_9] : memref<128x128xf32, #tpu.memory_space<vmem>>, vector<128x128xf32>
    tpu.vector_store %arg6[%c0_8, %c0_9], %7 {strides = array<i32>} : memref<128x128xf32, #tpu.memory_space<vmem>>, vector<128x128xf32>,
    return
  }
  func.func @transform_0(%arg0: i32, %arg1: i32) -> (i32, i32) {
    %c0_i32 = arith.constant 0 : i32
    return %arg0, %arg1 : i32, i32
  }
  func.func @transform_1(%arg0: i32, %arg1: i32) -> (i32, i32) {
    %c0_i32 = arith.constant 0 : i32
    %c0_i32_0 = arith.constant 0 : i32
    return %arg1, %c0_i32 : i32, i32
  }
  func.func @transform_2(%arg0: i32, %arg1: i32) -> (i32, i32) {
    %c0_i32 = arith.constant 0 : i32
    %c0_i32_0 = arith.constant 0 : i32
    %c0_i32_1 = arith.constant 0 : i32
    return %c0_i32, %c0_i32_0 : i32, i32
  }
  func.func @transform_3(%arg0: i32, %arg1: i32) -> (i32, i32) {
    %c0_i32 = arith.constant 0 : i32
    %c0_i32_0 = arith.constant 0 : i32
    %c0_i32_1 = arith.constant 0 : i32
    return %c0_i32, %c0_i32_0 : i32, i32
  }
  func.func @transform_4(%arg0: i32, %arg1: i32) -> (i32, i32) {
    %c0_i32 = arith.constant 0 : i32
    %c0_i32_0 = arith.constant 0 : i32
    return %arg0, %c0_i32 : i32, i32
  }
}

</mosaic_0001>

<bundles_post_ra>
// kernel: tpu_custom_call.1
= control target key start
LH: loop header
LB: loop body
LE: loop exit
PB: predicated region body
PF: predicated region fallthrough
CT: control target
= control target key end

     0   :  { %s536_s0 = inlined_call_operand.vmem [shape: f32[128,128], index: 0, kind: input, shape index: {}]   ;;  %s537_s1 = inlined_call_operand.vmem [shape: f32[128,64], index: 1, kind: input, shape index: {}]   ;;  %s538_s2 = inlined_call_operand.vmem [shape: f32[64,128], index: 2, kind: input, shape index: {}]   ;;  %s539_s3 = inlined_call_operand.vmem [shape: f32[1,128], index: 3, kind: input, shape index: {}]   ;;  %s540_s4 = inlined_call_operand.hbm [shape: f32[128,128], index: 4, kind: output, shape index: {}]  }
   0x1   :  { %v57_v0 = vld [vmem:[%s538_s2 + $0x38] sm:$0xff]  ;;  %v56_v1 = vld [vmem:[%s538_s2 + $0x30] sm:$0xff]  ;;  %v55_v2 = vld [vmem:[%s538_s2 + $0x28] sm:$0xff] }
   0x2   :  { %291 = vmatpush.msra.mxu3 %v57_v0  ;;  %115 = vmatpush.msra.mxu0 %v57_v0  ;;  %v54_v3 = vld [vmem:[%s538_s2 + $0x20] sm:$0xff] }
   0x4   :  { %292 = vmatpush.msra.mxu3 %v56_v1  ;;  %116 = vmatpush.msra.mxu0 %v56_v1 }
   0x6   :  { %293 = vmatpush.msra.mxu3 %v55_v2  ;;  %117 = vmatpush.msra.mxu0 %v55_v2 }
   0x7   :  { %9 = vsyncpa [#allocation4], 0  ;;  %v53_v4 = vld [vmem:[%s538_s2 + $0x18] sm:$0xff]  ;;  %v52_v5 = vld [vmem:[%s538_s2 + $0x10] sm:$0xff]  ;;  %vm58_vm0 = vcmask 523264   ;;  %s263_s16 = sshll.u32 %s540_s4, 4  ;;  %s264_s16 = int_to_ptr.hbm [resolvable:$true] %s263_s16 }
   0x8   :  { %294 = vmatpush.msra.mxu3 %v54_v3  ;;  %118 = vmatpush.msra.mxu0 %v54_v3  ;;  %v51_v6 = vld [vmem:[%s538_s2 + $0x8] sm:$0xff]  ;;  %v50_v7 = vld [vmem:[%s538_s2] sm:$0xff]  ;;  %v44_v10 = vld [vmem:[%s537_s1 + $0x50] sm:$0xff]  ;;  %s362_s17 = smov 128   ;;  %s363_s18 = smov 8  }
   0x9   :  { %v43_v8 = vld [vmem:[%s537_s1 + $0x48] sm:$0xff]  ;;  %v34_v9 = vld [vmem:[%s537_s1] sm:$0xff]  ;;  %v45_v12 = vld [vmem:[%s537_s1 + $0x58] sm:$0xff] }
   0xa   :  { %295 = vmatpush.msra.mxu3 %v53_v4  ;;  %119 = vmatpush.msra.mxu0 %v53_v4  ;;  %v35_v11 = vld [vmem:[%s537_s1 + $0x8] sm:$0xff]  ;;  %v36_v13 = vld [vmem:[%s537_s1 + $0x10] sm:$0xff]  ;;  %v46_v14 = vld [vmem:[%s537_s1 + $0x60] sm:$0xff] }
   0xb   :  { %v37_v15 = vld [vmem:[%s537_s1 + $0x18] sm:$0xff]  ;;  %v47_v16 = vld [vmem:[%s537_s1 + $0x68] sm:$0xff]  ;;  %v38_v17 = vld [vmem:[%s537_s1 + $0x20] sm:$0xff] }
   0xc   :  { %296 = vmatpush.msra.mxu3 %v52_v5  ;;  %120 = vmatpush.msra.mxu0 %v52_v5  ;;  %v48_v18 = vld [vmem:[%s537_s1 + $0x70] sm:$0xff]  ;;  %v39_v19 = vld [vmem:[%s537_s1 + $0x28] sm:$0xff]  ;;  %v49_v20 = vld [vmem:[%s537_s1 + $0x78] sm:$0xff] }
   0xd   :  { %v40_v21 = vld [vmem:[%s537_s1 + $0x30] sm:$0xff]  ;;  %v41_v22 = vld [vmem:[%s537_s1 + $0x38] sm:$0xff]  ;;  %v42_v23 = vld [vmem:[%s537_s1 + $0x40] sm:$0xff] }
   0xe   :  { %297 = vmatpush.msra.mxu3 %v51_v6  ;;  %121 = vmatpush.msra.mxu0 %v51_v6  ;;  %v25_v40 = vld [vmem:[%s536_s0 + $0x38] sm:$0xff]  ;;  %v18_v41 = vld [vmem:[%s536_s0] sm:$0xff]  ;;  %v19_v43 = vld [vmem:[%s536_s0 + $0x8] sm:$0xff] }
   0xf   :  { %v26_v42 = vld [vmem:[%s536_s0 + $0x40] sm:$0xff]  ;;  %v32_v44 = vld [vmem:[%s536_s0 + $0x70] sm:$0xff]  ;;  %v27_v45 = vld [vmem:[%s536_s0 + $0x48] sm:$0xff] }
  0x10   :  { %298 = vmatpush.msra.mxu3 %v50_v7  ;;  %122 = vmatpush.msra.mxu0 %v50_v7  ;;  %v20_v46 = vld [vmem:[%s536_s0 + $0x10] sm:$0xff]  ;;  %v33_v47 = vld [vmem:[%s536_s0 + $0x78] sm:$0xff]  ;;  %v22_v51 = vld [vmem:[%s536_s0 + $0x20] sm:$0xff] }
  0x11   :  { %284 = vmatmul.msk.f32.vlgmr.msra.gmra.mxu3 %vm58_vm0, %v43_v8  ;;  %275 = vmatmul.msk.f32.vlgmr.msra.gmra.mxu0 %vm58_vm0, %v34_v9  ;;  %v28_v48 = vld [vmem:[%s536_s0 + $0x50] sm:$0xff]  ;;  %v21_v49 = vld [vmem:[%s536_s0 + $0x18] sm:$0xff]  ;;  %v30_v52 = vld [vmem:[%s536_s0 + $0x60] sm:$0xff] }
  0x12   :  { %v29_v50 = vld [vmem:[%s536_s0 + $0x58] sm:$0xff]  ;;  %v23_v53 = vld [vmem:[%s536_s0 + $0x28] sm:$0xff]  ;;  %v24_v55 = vld [vmem:[%s536_s0 + $0x30] sm:$0xff] }
  0x13   :  { %v31_v54 = vld [vmem:[%s536_s0 + $0x68] sm:$0xff]  ;;  %v334_v56 = vld [vmem:[%s539_s3] ss:$0 sm:$0xff]  ;;  %s361_s0 = smov [#allocation3]  }
  0x14   :  { %s261_s3 = sshll.u32 %s361_s0, 4  ;;  %s262_s3 = int_to_ptr.vmem [resolvable:$true] %s261_s3 }
  0x19   :  { %285 = vmatmul.msk.f32.gmra.mxu3 %vm58_vm0, %v44_v10  ;;  %276 = vmatmul.msk.f32.gmra.mxu0 %vm58_vm0, %v35_v11 }
  0x21   :  { %286 = vmatmul.msk.f32.gmra.mxu3 %vm58_vm0, %v45_v12  ;;  %277 = vmatmul.msk.f32.gmra.mxu0 %vm58_vm0, %v36_v13 }
  0x29   :  { %287 = vmatmul.msk.f32.gmra.mxu3 %vm58_vm0, %v46_v14  ;;  %278 = vmatmul.msk.f32.gmra.mxu0 %vm58_vm0, %v37_v15 }
  0x31   :  { %288 = vmatmul.msk.f32.gmra.mxu3 %vm58_vm0, %v47_v16  ;;  %279 = vmatmul.msk.f32.gmra.mxu0 %vm58_vm0, %v38_v17 }
  0x39   :  { %289 = vmatmul.msk.f32.gmra.mxu3 %vm58_vm0, %v48_v18  ;;  %280 = vmatmul.msk.f32.gmra.mxu0 %vm58_vm0, %v39_v19 }
  0x41   :  { %290 = vmatmul.msk.f32.gmra.mxu3 %vm58_vm0, %v49_v20  ;;  %281 = vmatmul.msk.f32.gmra.mxu0 %vm58_vm0, %v40_v21 }
  0x49   :  { %282 = vmatmul.msk.f32.gmra.mxu0 %vm58_vm0, %v41_v22 }
  0x51   :  { %283 = vmatmul.msk.f32.gmra.mxu0 %vm58_vm0, %v42_v23 }
  0x8e   :  { %v477_v24 = vpop.f32.mrf.mxu0 }
  0x94   :  { %v151_v25 = vpop.f32.mrf.mxu3 }
  0x96   :  { %v127_v26 = vpop.f32.mrf.mxu0 }
  0x9c   :  { %v154_v27 = vpop.f32.mrf.mxu3 }
  0x9e   :  { %v130_v28 = vpop.f32.mrf.mxu0 }
  0xa4   :  { %v157_v29 = vpop.f32.mrf.mxu3 }
  0xa6   :  { %v133_v30 = vpop.f32.mrf.mxu0 }
  0xac   :  { %v160_v31 = vpop.f32.mrf.mxu3 }
  0xae   :  { %v136_v32 = vpop.f32.mrf.mxu0 }
  0xb4   :  { %v163_v33 = vpop.f32.mrf.mxu3 }
  0xb6   :  { %v139_v34 = vpop.f32.mrf.mxu0 }
  0xbc   :  { %v166_v35 = vpop.f32.mrf.mxu3 }
  0xbe   :  { %v142_v36 = vpop.f32.mrf.mxu0 }
  0xc4   :  { %v169_v37 = vpop.f32.mrf.mxu3 }
  0xc5   :  { %176 = vmatpush.msra.mxu1 %v169_v37  ;;  %299 = vmatpush.msra.mxu2 %v169_v37 }
  0xc6   :  { %300 = vmatpush.msrb.mxu3 %v169_v37  ;;  %v145_v38 = vpop.f32.mrf.mxu0 }
  0xc7   :  { %177 = vmatpush.msra.mxu1 %v166_v35  ;;  %301 = vmatpush.msra.mxu2 %v166_v35 }
  0xc8   :  { %302 = vmatpush.msrb.mxu3 %v166_v35 }
  0xc9   :  { %178 = vmatpush.msra.mxu1 %v163_v33  ;;  %303 = vmatpush.msra.mxu2 %v163_v33 }
  0xca   :  { %304 = vmatpush.msrb.mxu3 %v163_v33 }
  0xcb   :  { %179 = vmatpush.msra.mxu1 %v160_v31  ;;  %305 = vmatpush.msra.mxu2 %v160_v31 }
  0xcc   :  { %306 = vmatpush.msrb.mxu3 %v160_v31 }
  0xcd   :  { %180 = vmatpush.msra.mxu1 %v157_v29  ;;  %307 = vmatpush.msra.mxu2 %v157_v29 }
  0xce   :  { %308 = vmatpush.msrb.mxu3 %v157_v29  ;;  %v148_v39 = vpop.f32.mrf.mxu0 }
  0xcf   :  { %181 = vmatpush.msra.mxu1 %v154_v27  ;;  %309 = vmatpush.msra.mxu2 %v154_v27 }
  0xd0   :  { %310 = vmatpush.msrb.mxu3 %v154_v27 }
  0xd1   :  { %182 = vmatpush.msra.mxu1 %v151_v25  ;;  %311 = vmatpush.msra.mxu2 %v151_v25 }
  0xd2   :  { %312 = vmatpush.msrb.mxu3 %v151_v25 }
  0xd3   :  { %183 = vmatpush.msra.mxu1 %v148_v39  ;;  %313 = vmatpush.msra.mxu2 %v148_v39 }
  0xd4   :  { %314 = vmatpush.msrb.mxu3 %v148_v39 }
  0xd5   :  { %184 = vmatpush.msra.mxu1 %v145_v38  ;;  %315 = vmatpush.msra.mxu2 %v145_v38 }
  0xd6   :  { %316 = vmatpush.msrb.mxu3 %v145_v38 }
  0xd7   :  { %185 = vmatpush.msra.mxu1 %v142_v36  ;;  %317 = vmatpush.msra.mxu2 %v142_v36 }
  0xd8   :  { %318 = vmatpush.msrb.mxu3 %v142_v36 }
  0xd9   :  { %186 = vmatpush.msra.mxu1 %v139_v34  ;;  %319 = vmatpush.msra.mxu2 %v139_v34 }
  0xda   :  { %320 = vmatpush.msrb.mxu3 %v139_v34 }
  0xdb   :  { %187 = vmatpush.msra.mxu1 %v136_v32  ;;  %321 = vmatpush.msra.mxu2 %v136_v32 }
  0xdc   :  { %322 = vmatpush.msrb.mxu3 %v136_v32 }
  0xdd   :  { %188 = vmatpush.msra.mxu1 %v133_v30  ;;  %323 = vmatpush.msra.mxu2 %v133_v30 }
  0xde   :  { %324 = vmatpush.msrb.mxu3 %v133_v30 }
  0xdf   :  { %189 = vmatpush.msra.mxu1 %v130_v28  ;;  %325 = vmatpush.msra.mxu2 %v130_v28 }
  0xe0   :  { %326 = vmatpush.msrb.mxu3 %v130_v28 }
  0xe1   :  { %190 = vmatpush.msra.mxu1 %v127_v26  ;;  %327 = vmatpush.msra.mxu2 %v127_v26 }
  0xe2   :  { %328 = vmatpush.msrb.mxu3 %v127_v26 }
  0xe3   :  { %191 = vmatpush.msra.mxu1 %v477_v24  ;;  %329 = vmatpush.msra.mxu2 %v477_v24 }
  0xe4   :  { %330 = vmatpush.msrb.mxu3 %v477_v24  ;;  %213 = vmatmul.f32.vlgmr.msra.gmra.mxu2 %v25_v40 }
  0xe5   :  { %192 = vmatmul.f32.vlgmr.msra.gmra.mxu1 %v18_v41  ;;  %234 = vmatmul.f32.vlgmr.msrb.gmra.mxu3 %v32_v44 }
  0xec   :  { %216 = vmatmul.f32.gmra.mxu2 %v26_v42 }
  0xed   :  { %195 = vmatmul.f32.gmra.mxu1 %v19_v43  ;;  %237 = vmatmul.f32.gmra.mxu3 %v33_v47 }
  0xf4   :  { %219 = vmatmul.f32.gmra.mxu2 %v27_v45 }
  0xf5   :  { %198 = vmatmul.f32.gmra.mxu1 %v20_v46 }
  0xfc   :  { %222 = vmatmul.f32.gmra.mxu2 %v28_v48 }
  0xfd   :  { %201 = vmatmul.f32.gmra.mxu1 %v21_v49 }
 0x104   :  { %225 = vmatmul.f32.gmra.mxu2 %v29_v50 }
 0x105   :  { %204 = vmatmul.f32.gmra.mxu1 %v22_v51 }
 0x10c   :  { %228 = vmatmul.f32.gmra.mxu2 %v30_v52 }
 0x10d   :  { %207 = vmatmul.f32.gmra.mxu1 %v23_v53 }
 0x114   :  { %231 = vmatmul.f32.gmra.mxu2 %v31_v54 }
 0x115   :  { %210 = vmatmul.f32.gmra.mxu1 %v24_v55 }
 0x162   :  { %v193_v57 = vpop.f32.mrf.mxu1 }
 0x163   :  { %v194_v58 = vadd.f32 %v334_v56, %v193_v57 }
 0x165   :  { %241 = vst [vmem:[#allocation3] sm:$0xff] %v194_v58 }
 0x167   :  { %v214_v59 = vpop.f32.mrf.mxu2 }
 0x168   :  { %v215_v60 = vadd.f32 %v334_v56, %v214_v59  ;;  %v235_v1 = vpop.f32.mrf.mxu3 }
 0x169   :  { %v236_v2 = vadd.f32 %v334_v56, %v235_v1 }
 0x16a   :  { %248 = vst [vmem:[#allocation3 + $0x38] sm:$0xff] %v215_v60  ;;  %v196_v61 = vpop.f32.mrf.mxu1 }
 0x16b   :  { %v197_v62 = vadd.f32 %v334_v56, %v196_v61  ;;  %255 = vst [vmem:[#allocation3 + $0x70] sm:$0xff] %v236_v2 }
 0x16d   :  { %242 = vst [vmem:[#allocation3 + $0x8] sm:$0xff] %v197_v62 }
 0x16f   :  { %v217_v63 = vpop.f32.mrf.mxu2 }
 0x170   :  { %v218_v0 = vadd.f32 %v334_v56, %v217_v63  ;;  %v238_v7 = vpop.f32.mrf.mxu3 }
 0x171   :  { %v239_v8 = vadd.f32 %v334_v56, %v238_v7 }
 0x172   :  { %249 = vst [vmem:[#allocation3 + $0x40] sm:$0xff] %v218_v0  ;;  %v199_v3 = vpop.f32.mrf.mxu1 }
 0x173   :  { %v200_v4 = vadd.f32 %v334_v56, %v199_v3  ;;  %256 = vst [vmem:[#allocation3 + $0x78] sm:$0xff] %v239_v8 }
 0x175   :  { %243 = vst [vmem:[#allocation3 + $0x10] sm:$0xff] %v200_v4 }
 0x177   :  { %v220_v5 = vpop.f32.mrf.mxu2 }
 0x178   :  { %v221_v6 = vadd.f32 %v334_v56, %v220_v5 }
 0x17a   :  { %250 = vst [vmem:[#allocation3 + $0x48] sm:$0xff] %v221_v6  ;;  %v202_v9 = vpop.f32.mrf.mxu1 }
 0x17b   :  { %v203_v10 = vadd.f32 %v334_v56, %v202_v9 }
 0x17d   :  { %244 = vst [vmem:[#allocation3 + $0x18] sm:$0xff] %v203_v10 }
 0x17f   :  { %v223_v11 = vpop.f32.mrf.mxu2 }
 0x180   :  { %v224_v12 = vadd.f32 %v334_v56, %v223_v11 }
 0x182   :  { %251 = vst [vmem:[#allocation3 + $0x50] sm:$0xff] %v224_v12  ;;  %v205_v13 = vpop.f32.mrf.mxu1 }
 0x183   :  { %v206_v14 = vadd.f32 %v334_v56, %v205_v13 }
 0x185   :  { %245 = vst [vmem:[#allocation3 + $0x20] sm:$0xff] %v206_v14 }
 0x187   :  { %v226_v15 = vpop.f32.mrf.mxu2 }
 0x188   :  { %v227_v16 = vadd.f32 %v334_v56, %v226_v15 }
 0x18a   :  { %252 = vst [vmem:[#allocation3 + $0x58] sm:$0xff] %v227_v16  ;;  %v208_v17 = vpop.f32.mrf.mxu1 }
 0x18b   :  { %v209_v18 = vadd.f32 %v334_v56, %v208_v17 }
 0x18d   :  { %246 = vst [vmem:[#allocation3 + $0x28] sm:$0xff] %v209_v18 }
 0x18f   :  { %v229_v19 = vpop.f32.mrf.mxu2 }
 0x190   :  { %v230_v20 = vadd.f32 %v334_v56, %v229_v19 }
 0x192   :  { %253 = vst [vmem:[#allocation3 + $0x60] sm:$0xff] %v230_v20  ;;  %v211_v21 = vpop.f32.mrf.mxu1 }
 0x193   :  { %v212_v22 = vadd.f32 %v334_v56, %v211_v21 }
 0x195   :  { %247 = vst [vmem:[#allocation3 + $0x30] sm:$0xff] %v212_v22 }
 0x197   :  { %v232_v23 = vpop.f32.mrf.mxu2 }
 0x198   :  { %v233_v24 = vadd.f32 %v334_v56, %v232_v23 }
 0x19a   :  { %254 = vst [vmem:[#allocation3 + $0x68] sm:$0xff] %v233_v24 }
 0x19b   :  { %269 = dma.vmem_to_hbm [thread:$0]  %s262_s3, 2048, %s264_s16, [#allocation4], %s362_s17, %s362_s17, %s363_s18  }
 0x19c   :  { %359 = dma.done.wait [#allocation4], 2048  }
 0x19d   :  { %360 = vsyncadd [#allocation4], 4294965248 }
 0x19e   :  { %274 = vsyncpa [#allocation4], 1 }

</bundles_post_ra>
